<compile_context>
chip_gen: v7x
topology: tpu7x:2x2x1
jax: 0.10.0
libtpu: 0.0.40
codegen_flags: <defaults>
</compile_context>

<pallas_src>
import functools

import jax
import jax.numpy as jnp
from jax.experimental import pallas as pl
from jax.experimental.pallas import tpu as pltpu


def _round_up(x, m):
    return ((x + m - 1) // m) * m


def _interaction_kernel(h_ref, e_ref, g_ref, w_ref, b_ref, o_ref):
    # Three MXU matmuls against static row-slices of the resident packed
    # weight W_cat = [W_h^T; W_e^T; W_g^T], all accumulated in f32, then
    # bias add (VPU) + tanh (EUP) in f32.
    H = h_ref.shape[1]
    D = g_ref.shape[1]
    acc = jnp.dot(h_ref[...], w_ref[0:H, :],
                  preferred_element_type=jnp.float32)
    acc = acc + jnp.dot(e_ref[...], w_ref[H:2 * H, :],
                        preferred_element_type=jnp.float32)
    acc = acc + jnp.dot(g_ref[...], w_ref[2 * H:2 * H + D, :],
                        preferred_element_type=jnp.float32)
    acc = acc + b_ref[...]          # b_ref is [1, H] f32, broadcasts over rows
    o_ref[...] = jnp.tanh(acc).astype(o_ref.dtype)


def prepare_interaction_params(W_h, W_e, W_g, b_h, *, compute_dtype=jnp.bfloat16):
    """One-time parameter packing (call OUTSIDE the per-step path).

    W_* are PyTorch nn.Linear weights, layout [out, in]. Transpose to
    [in, out] and stack along the contraction axis:
        W_cat = [W_h^T; W_e^T; W_g^T]   shape [2H + D, H]
    Weights are stored in bf16 (halves HBM bytes); bias stays f32.
    """
    W_cat = jnp.concatenate([W_h.T, W_e.T, W_g.T], axis=0).astype(compute_dtype)
    b2d = b_h.reshape(1, -1).astype(jnp.float32)
    return W_cat, b2d


@functools.partial(jax.jit, static_argnames=("block_b",))
def interaction_module(h_tilde, e_t, g_t, W_cat, b2d, *, block_b=None):
    """Fused forward: tanh(h @ W_h^T + e @ W_e^T + g @ W_g^T + b)."""
    B, H = h_tilde.shape
    D = g_t.shape[1]
    K = W_cat.shape[0]
    assert K == 2 * H + D
    out_dtype = h_tilde.dtype

    # Cast activations to the (bf16) compute dtype of the packed weights.
    cdt = W_cat.dtype
    h = h_tilde.astype(cdt)
    e = e_t.astype(cdt)
    g = g_t.astype(cdt)

    if block_b is None:
        # Big tiles amortize per-grid-step overhead; VMEM is never binding here.
        block_b = min(_round_up(B, 8), 1024)
        # Ensure >= 2 grid steps when the batch allows it, so v7x's second
        # TensorCore gets work (harmless on v5e/v6e).
        if B >= 16 and -(-B // block_b) < 2:
            block_b = max(8, _round_up(-(-B // 2), 8))
    assert block_b % 8 == 0, "batch tile must respect the (8,128) sublane rule"

    # Tail handling: pad the batch to a multiple of the tile, slice on return.
    Bp = _round_up(B, block_b)
    if Bp != B:
        pad = Bp - B
        h = jnp.pad(h, ((0, pad), (0, 0)))
        e = jnp.pad(e, ((0, pad), (0, 0)))
        g = jnp.pad(g, ((0, pad), (0, 0)))

    grid = (Bp // block_b,)

    item = jnp.dtype(cdt).itemsize
    cost = pl.CostEstimate(
        flops=2 * Bp * K * H,
        transcendentals=Bp * H,
        bytes_accessed=(Bp * (2 * H + D)) * item      # activations in
        + K * H * item                                # packed weights
        + H * 4                                       # bias
        + Bp * H * jnp.dtype(out_dtype).itemsize,     # output
    )

    out = pl.pallas_call(
        _interaction_kernel,
        out_shape=jax.ShapeDtypeStruct((Bp, H), out_dtype),
        grid_spec=pltpu.PrefetchScalarGridSpec(
            num_scalar_prefetch=0,
            grid=grid,
            in_specs=[
                # Activations stream per batch tile (no wrapper-side concat).
                pl.BlockSpec((block_b, H), lambda i: (i, 0)),
                pl.BlockSpec((block_b, H), lambda i: (i, 0)),
                pl.BlockSpec((block_b, D), lambda i: (i, 0)),
                # Packed weights + bias: constant index_map -> VMEM-resident.
                pl.BlockSpec((K, H), lambda i: (0, 0)),
                pl.BlockSpec((1, H), lambda i: (0, 0)),
            ],
            out_specs=pl.BlockSpec((block_b, H), lambda i: (i, 0)),
        ),
        compiler_params=pltpu.CompilerParams(
            # Independent batch tiles: shard across v7x's 2 TensorCores.
            dimension_semantics=("parallel",),
        ),
        cost_estimate=cost,
    )(h, e, g, W_cat, b2d)

    return out[:B] if Bp != B else out


if __name__ == "__main__":
    key = jax.random.PRNGKey(0)
    batch, input_dim, hidden_dim = 8, 16, 32

    k1, k2, k3, k4, k5, k6 = jax.random.split(key, 6)

    # Deterministic synthetic parameters (PyTorch nn.Linear layout: [out, in]).
    W_h = jax.random.normal(k1, (hidden_dim, hidden_dim), jnp.float32) * 0.1
    W_e = jax.random.normal(k2, (hidden_dim, hidden_dim), jnp.float32) * 0.1
    W_g = jax.random.normal(k3, (hidden_dim, input_dim), jnp.float32) * 0.1
    b_h = jnp.zeros((hidden_dim,), jnp.float32)  # nn.Parameter(torch.zeros(hidden_dim))

    # Inputs.
    h_tilde = jax.random.normal(k4, (batch, hidden_dim), jnp.float32)
    e_t = jax.random.normal(k5, (batch, hidden_dim), jnp.float32)
    g_t = jax.random.normal(k6, (batch, input_dim), jnp.float32)

    # One-time parameter packing (static; NOT repeated per step).
    W_cat, b2d = prepare_interaction_params(W_h, W_e, W_g, b_h)
    W_cat = jax.block_until_ready(W_cat)

    out = interaction_module(h_tilde, e_t, g_t, W_cat, b2d)
    out = jax.block_until_ready(out)

    # Reference check (plain JAX, f32). Tolerance relaxed for bf16 inputs/weights.
    ref = jnp.tanh(h_tilde @ W_h.T + e_t @ W_e.T + g_t @ W_g.T + b_h)
    assert out.shape == (batch, hidden_dim)
    assert jnp.allclose(out, ref, atol=2e-2, rtol=2e-2), (
        float(jnp.max(jnp.abs(out - ref))))

    print("KERNEL_OK")
</pallas_src>

<mosaic_0001>
module attributes {stable_mosaic.version = 11 : i64} {
  func.func @_interaction_kernel(%arg0: i32, %arg1: memref<8x32xbf16, #tpu.memory_space<vmem>>, %arg2: memref<8x32xbf16, #tpu.memory_space<vmem>>, %arg3: memref<8x16xbf16, #tpu.memory_space<vmem>>, %arg4: memref<80x32xbf16, #tpu.memory_space<vmem>>, %arg5: memref<1x32xf32, #tpu.memory_space<vmem>>, %arg6: memref<8x32xf32, #tpu.memory_space<vmem>>) attributes {dimension_semantics = [#tpu.dimension_semantics<parallel>], iteration_bounds = array<i64: 1>, scalar_prefetch = 0 : i64, scratch_operands = 0 : i64, tpu.core_type = #tpu.core_type<tc>, window_params = [{transform_indices = @transform_0, window_bounds = array<i64: 8, 32>}, {transform_indices = @transform_1, window_bounds = array<i64: 8, 32>}, {transform_indices = @transform_2, window_bounds = array<i64: 8, 16>}, {pipeline_mode = #tpu.pipeline_mode<synchronous>, transform_indices = @transform_3, window_bounds = array<i64: 80, 32>}, {pipeline_mode = #tpu.pipeline_mode<synchronous>, transform_indices = @transform_4, window_bounds = array<i64: 1, 32>}, {transform_indices = @transform_5, window_bounds = array<i64: 8, 32>}]} {
    %c0 = arith.constant 0 : index
    %c0_0 = arith.constant 0 : index
    %0 = vector.load %arg1[%c0, %c0_0] : memref<8x32xbf16, #tpu.memory_space<vmem>>, vector<8x32xbf16>
    %c0_1 = arith.constant 0 : index
    %c0_2 = arith.constant 0 : index
    %1 = vector.load %arg4[%c0_1, %c0_2] : memref<80x32xbf16, #tpu.memory_space<vmem>>, vector<32x32xbf16>
    %cst = arith.constant dense<0.000000e+00> : vector<8x32xf32>
    %2 = tpu.matmul %0, %1, %cst {dimension_numbers = #tpu.dot_dimension_numbers<[1], [0], [0], [1], [0, 0, 1, 1], [], []>} : vector<8x32xbf16>, vector<32x32xbf16>, vector<8x32xf32> -> vector<8x32xf32>
    %c0_3 = arith.constant 0 : index
    %c0_4 = arith.constant 0 : index
    %3 = vector.load %arg2[%c0_3, %c0_4] : memref<8x32xbf16, #tpu.memory_space<vmem>>, vector<8x32xbf16>
    %c32 = arith.constant 32 : index
    %c0_5 = arith.constant 0 : index
    %4 = vector.load %arg4[%c32, %c0_5] : memref<80x32xbf16, #tpu.memory_space<vmem>>, vector<32x32xbf16>
    %cst_6 = arith.constant dense<0.000000e+00> : vector<8x32xf32>
    %5 = tpu.matmul %3, %4, %cst_6 {dimension_numbers = #tpu.dot_dimension_numbers<[1], [0], [0], [1], [0, 0, 1, 1], [], []>} : vector<8x32xbf16>, vector<32x32xbf16>, vector<8x32xf32> -> vector<8x32xf32>
    %6 = arith.addf %2, %5 : vector<8x32xf32>
    %c0_7 = arith.constant 0 : index
    %c0_8 = arith.constant 0 : index
    %7 = vector.load %arg3[%c0_7, %c0_8] : memref<8x16xbf16, #tpu.memory_space<vmem>>, vector<8x16xbf16>
    %c64 = arith.constant 64 : index
    %c0_9 = arith.constant 0 : index
    %8 = vector.load %arg4[%c64, %c0_9] : memref<80x32xbf16, #tpu.memory_space<vmem>>, vector<16x32xbf16>
    %cst_10 = arith.constant dense<0.000000e+00> : vector<8x32xf32>
    %9 = tpu.matmul %7, %8, %cst_10 {dimension_numbers = #tpu.dot_dimension_numbers<[1], [0], [0], [1], [0, 0, 1, 1], [], []>} : vector<8x16xbf16>, vector<16x32xbf16>, vector<8x32xf32> -> vector<8x32xf32>
    %10 = arith.addf %6, %9 : vector<8x32xf32>
    %c0_11 = arith.constant 0 : index
    %c0_12 = arith.constant 0 : index
    %11 = vector.load %arg5[%c0_11, %c0_12] : memref<1x32xf32, #tpu.memory_space<vmem>>, vector<1x32xf32>
    %12 = vector.broadcast %11 : vector<1x32xf32> to vector<8x32xf32>
    %13 = arith.addf %10, %12 : vector<8x32xf32>
    %14 = math.tanh %13 : vector<8x32xf32>
    %c0_13 = arith.constant 0 : index
    %c0_14 = arith.constant 0 : index
    %15 = vector.load %arg6[%c0_13, %c0_14] : memref<8x32xf32, #tpu.memory_space<vmem>>, vector<8x32xf32>
    tpu.vector_store %arg6[%c0_13, %c0_14], %14 {strides = array<i32>} : memref<8x32xf32, #tpu.memory_space<vmem>>, vector<8x32xf32>,
    return
  }
  func.func @transform_0(%arg0: i32) -> (i32, i32) {
    %c0_i32 = arith.constant 0 : i32
    %c0_i32_0 = arith.constant 0 : i32
    return %arg0, %c0_i32 : i32, i32
  }
  func.func @transform_1(%arg0: i32) -> (i32, i32) {
    %c0_i32 = arith.constant 0 : i32
    %c0_i32_0 = arith.constant 0 : i32
    return %arg0, %c0_i32 : i32, i32
  }
  func.func @transform_2(%arg0: i32) -> (i32, i32) {
    %c0_i32 = arith.constant 0 : i32
    %c0_i32_0 = arith.constant 0 : i32
    return %arg0, %c0_i32 : i32, i32
  }
  func.func @transform_3(%arg0: i32) -> (i32, i32) {
    %c0_i32 = arith.constant 0 : i32
    %c0_i32_0 = arith.constant 0 : i32
    %c0_i32_1 = arith.constant 0 : i32
    return %c0_i32, %c0_i32_0 : i32, i32
  }
  func.func @transform_4(%arg0: i32) -> (i32, i32) {
    %c0_i32 = arith.constant 0 : i32
    %c0_i32_0 = arith.constant 0 : i32
    %c0_i32_1 = arith.constant 0 : i32
    return %c0_i32, %c0_i32_0 : i32, i32
  }
  func.func @transform_5(%arg0: i32) -> (i32, i32) {
    %c0_i32 = arith.constant 0 : i32
    %c0_i32_0 = arith.constant 0 : i32
    return %arg0, %c0_i32 : i32, i32
  }
}

</mosaic_0001>

<bundles_post_ra>
// kernel: interaction_module.1
= control target key start
LH: loop header
LB: loop body
LE: loop exit
PB: predicated region body
PF: predicated region fallthrough
CT: control target
= control target key end

     0   :  { %v294_v1 = vmov 0.0   ;;  %vm295_vm0 = vmmov 0   ;;  %vm44_vm1 = vcmask 261120   ;;  %s372_s0 = inlined_call_operand.vmem [shape: bf16[8,32], index: 0, kind: input, shape index: {}]   ;;  %s373_s1 = inlined_call_operand.vmem [shape: bf16[8,32], index: 1, kind: input, shape index: {}]   ;;  %s374_s2 = inlined_call_operand.vmem [shape: bf16[8,16], index: 2, kind: input, shape index: {}]   ;;  %s375_s3 = inlined_call_operand.vmem [shape: bf16[80,32], index: 3, kind: input, shape index: {}]   ;;  %s376_s4 = inlined_call_operand.vmem [shape: f32[1,32], index: 4, kind: input, shape index: {}]   ;;  %s377_s5 = inlined_call_operand.hbm [shape: f32[8,32], index: 5, kind: output, shape index: {}]  }
   0x1   :  { %v263_v0 = vld [vmem:[%s375_s3 + $0x10] sm:$0xff]   ;;  %238 = vmatprep.subr.bf16.mxu0 %v294_v1  ;;  %246 = vmatprep.subr.bf16.mxu1 %v294_v1  ;;  %v264_v2 = vld [vmem:[%s375_s3] sm:$0xff]   ;;  %v265_v3 = vld [vmem:[%s375_s3 + $0x18] sm:$0xff]  }
   0x2   :  { %239 = vmatpush3.bf16.msra.mxu0 %v263_v0  ;;  %242 = vmatprep.mubr.msk.bf16.mxu0 %vm295_vm0, %v294_v1  ;;  %v266_v4 = vld [vmem:[%s375_s3 + $0x8] sm:$0xff]   ;;  %v27_v5 = vld [vmem:[%s373_s1] sm:$0xf] }
   0x3   :  { %247 = vmatpush3.bf16.msra.mxu1 %v264_v2  ;;  %240 = vmatprep.subr.bf16.mxu0 %v294_v1  ;;  %v267_v6 = vld [vmem:[%s375_s3 + $0x20] sm:$0xff]  }
   0x4   :  { %248 = vmatprep.subr.bf16.mxu1 %v294_v1  ;;  %250 = vmatprep.mubr.msk.bf16.mxu1 %vm295_vm0, %v294_v1 }
   0x6   :  { %241 = vmatpush3.bf16.msra.mxu0 %v265_v3 }
   0x7   :  { %10 = vsyncpa [#allocation3], 0  ;;  %249 = vmatpush3.bf16.msra.mxu1 %v266_v4  ;;  %254 = vmatprep.subr.bf16.mxu0 %v294_v1  ;;  %v22_v7 = vld [vmem:[%s372_s0] sm:$0xf]  ;;  %vm152_vm2 = vcmask 130048  }
   0x8   :  { %v143_v8 = vld [vmem:[%s374_s2] sm:$0xf]  ;;  %s296_s2 = smov [#allocation2]  }
   0x9   :  { %243 = vmatmul.mubr.msk.bf16.vlgmr.msra.gmra.mrb[0].mxu0 %vm44_vm1, %v27_v5  ;;  %v229_v19 = vld [vmem:[%s376_s4] ss:$0 sm:$0xff]  ;;  %s213_s8 = sshll.u32 %s296_s2, 4  ;;  %s214_s8 = int_to_ptr.vmem [resolvable:$true] %s213_s8 }
   0xa   :  { %251 = vmatmul.mubr.msk.bf16.vlgmr.msra.gmra.mrb[0].mxu1 %vm44_vm1, %v22_v7  ;;  %255 = vmatpush3.bf16.msra.mxu0 %v267_v6  ;;  %s270_s9 = scalar_lea.vmem %s214_s8, 128  ;;  %p275_p1 = scmp.lt.s32.totalorder %s214_s8, %s214_s8 }
   0xb   :  { %256 = vmatprep.mubr.msk.bf16.mxu0 %vm295_vm0, %v294_v1  ;;  %p271_p0 = scmp.ne.s32.totalorder %s214_s8, %s270_s9  ;;  %p276_p2 = scmp.lt.s32.totalorder %s270_s9, %s270_s9 }
   0xd   :  { %p277_p3 = por %p276_p2, %p275_p1 }
   0xf   :  { %p278_p4 = pnand %p277_p3, %p271_p0 }
  0x11   :  { %257 = vmatmul.mubr.msk.bf16.vlgmr.msra.gmra.mrb[4].mxu0 %vm152_vm2, %v143_v8 }
  0xdc   :  { %v82_v9 = vpop.f32.mrb[0].mxu0 }
  0xdd   :  { %v244_v10 = vpop.f32.mrb[1].mxu0  ;;  %v137_v11 = vpop.f32.mrb[0].mxu1 }
  0xde   :  { %v138_v12 = vadd.f32 %v137_v11, %v82_v9  ;;  %v85_v13 = vpop.f32.mrb[2].mxu0  ;;  %v252_v14 = vpop.f32.mrb[1].mxu1 }
  0xdf   :  { %v245_v15 = vpop.f32.mrb[3].mxu0  ;;  %v140_v16 = vpop.f32.mrb[2].mxu1 }
  0xe0   :  { %v253_v17 = vpop.f32.mrb[3].mxu1 }
  0xe4   :  { %v190_v18 = vpop.f32.mrb[4].mxu0 }
  0xe5   :  { %v196_v20 = vadd.f32 %v190_v18, %v138_v12  ;;  %v258_v21 = vpop.f32.mrb[5].mxu0 }
  0xe6   :  { %v193_v22 = vpop.f32.mrb[6].mxu0 }
  0xe7   :  { %v204_v23 = vadd.f32 %v229_v19, %v196_v20  ;;  %v259_v24 = vpop.f32.mrb[7].mxu0 }
  0xe9   :  { %268 = vtanh.f32 %v204_v23 }
  0xf3   :  { %v269_v25 = vpop.eup %268 }
  0xf4   :  { %206 = vst.msk [vmem:[#allocation2] sm:$0xff] %vm44_vm1, %v269_v25 }
  0xf5   :  { %281 = shalt.err (!%p278_p4)
}
  0xf6   :  { %s282_s11 = scalar_lea.hbm %s377_s5, 128 }
  0xf7   :  { %p283_p5 = scmp.ne.s32.totalorder %s377_s5, %s282_s11  ;;  %p286_p6 = scmp.lt.u32.totalorder %s282_s11, %s377_s5 }
  0xf9   :  { %p288_p7 = pnand %p286_p6, %p283_p5 }
  0xfb   :  { %291 = shalt.err (!%p288_p7)
}
  0xfc   :  { %216 = dma.vmem_to_hbm [thread:$0]  %s214_s8, 128, %s377_s5, [#allocation3]  }
  0xfd   :  { %292 = dma.done.wait [#allocation3], 128  }
  0xfe   :  { %293 = vsyncadd [#allocation3], 4294967168 }
  0xff   :  { %220 = vsyncpa [#allocation3], 1 }

</bundles_post_ra>
